<compile_context>
chip_gen: v7x
topology: tpu7x:2x2x1
jax: 0.10.0
libtpu: 0.0.40
codegen_flags: <defaults>
</compile_context>

<pallas_src>
import jax
import jax.numpy as jnp
from jax import lax
from jax.experimental import pallas as pl
from jax.experimental.pallas import tpu as pltpu


def _agg_reg_kernel(mid_ref, hig_ref,
                    wk_ref, bk_ref,
                    wq_ref, bq_ref,
                    wv_ref, bv_ref,
                    out_ref):
    # mid_ref: (TB, N, D)  hig_ref: (TB, D)  out_ref: (TB, D)
    tb, n, d = mid_ref.shape
    mid3 = mid_ref[...]                            # (TB, N, D)
    hig = hig_ref[...]                             # (TB, D)

    # rar_k_w(mid): one batched (TB*N, D) @ (D, D) matmul + tanh.
    # (Leading-dim collapse only; D stays on lanes, so no layout shuffle.)
    mid2 = mid3.reshape(tb * n, d)
    mid_k = jnp.tanh(
        jnp.dot(mid2, wk_ref[...], preferred_element_type=jnp.float32)
        + bk_ref[...])                             # (TB*N, D)

    # rar_q_w(hig): (TB, D) @ (D, D) + tanh.
    hig_q = jnp.tanh(
        jnp.dot(hig, wq_ref[...], preferred_element_type=jnp.float32)
        + bq_ref[...])                             # (TB, D)

    # Fused v-projection: (mid_k * bcast(hig_q)) @ wv == mid_k . (hig_q * wv).
    vprime = hig_q * wv_ref[...]                   # (TB, D)  (wv stored (1, D))
    mid_k3 = mid_k.reshape(tb, n, d)
    s = (jnp.sum(mid_k3 * vprime[:, None, :], axis=-1)
         + bv_ref[0, 0])                           # (TB, N) scores, N on lanes

    # Softmax over the region axis (lane axis).
    s = s - jnp.max(s, axis=-1, keepdims=True)
    e = jnp.exp(s)
    p = e * pl.reciprocal(jnp.sum(e, axis=-1, keepdims=True), approx=True)

    # new_hig = sum_n p[b, n] * mid[b, n, :]
    new_hig = jnp.sum(p[:, :, None] * mid3, axis=1)   # (TB, D)

    # l2norm along D (rsqrt on the EUP; matches sqrt+eps reference to ~1e-7).
    sumsq = jnp.sum(new_hig * new_hig, axis=-1, keepdims=True)
    out_ref[...] = new_hig * lax.rsqrt(sumsq + 1e-12)


def _pick_tile_b(batch):
    """Largest multiple of 8 dividing B that still leaves >=2 grid steps
    (so v7x's two TensorCores both get work); otherwise whole batch."""
    for t in (64, 32, 16, 8):
        if t < batch and batch % t == 0:
            return t
    return batch


def aggregation_regulator(mid, hig, params):
    """mid: (B, N, D) f32, hig: (B, D) f32 -> (B, D) f32."""
    B, N, D = mid.shape
    tile_b = _pick_tile_b(B)
    grid_b = B // tile_b

    wk, bk, wq, bq, wv, bv = (params["wk"], params["bk"],
                              params["wq"], params["bq"],
                              params["wv"], params["bv"])

    return pl.pallas_call(
        _agg_reg_kernel,
        out_shape=jax.ShapeDtypeStruct((B, D), jnp.float32),
        grid_spec=pltpu.PrefetchScalarGridSpec(
            num_scalar_prefetch=0,
            grid=(grid_b,),
            in_specs=[
                pl.BlockSpec((tile_b, N, D), lambda b: (b, 0, 0)),   # mid
                pl.BlockSpec((tile_b, D), lambda b: (b, 0)),         # hig
                pl.BlockSpec((D, D), lambda b: (0, 0)),              # Wk
                pl.BlockSpec((1, D), lambda b: (0, 0)),              # bk
                pl.BlockSpec((D, D), lambda b: (0, 0)),              # Wq
                pl.BlockSpec((1, D), lambda b: (0, 0)),              # bq
                pl.BlockSpec((1, D), lambda b: (0, 0)),              # wv (row)
                pl.BlockSpec(memory_space=pltpu.MemorySpace.SMEM),   # bv scalar
            ],
            out_specs=pl.BlockSpec((tile_b, D), lambda b: (b, 0)),
        ),
        compiler_params=pltpu.CompilerParams(
            dimension_semantics=("parallel",)),
    )(mid, hig, wk, bk, wq, bq, wv, bv)


def init_params(key, sim_dim):
    """Deterministic synthetic parameters matching the module's shapes."""
    ks = jax.random.split(key, 6)
    scale = 1.0 / jnp.sqrt(jnp.float32(sim_dim))
    return {
        # stored as (in, out) so kernel computes x @ W + b
        "wk": jax.random.uniform(ks[0], (sim_dim, sim_dim), jnp.float32,
                                 -scale, scale),
        "bk": jax.random.uniform(ks[1], (1, sim_dim), jnp.float32,
                                 -scale, scale),
        "wq": jax.random.uniform(ks[2], (sim_dim, sim_dim), jnp.float32,
                                 -scale, scale),
        "bq": jax.random.uniform(ks[3], (1, sim_dim), jnp.float32,
                                 -scale, scale),
        # v-projection weight stored as a row vector (1, D)
        "wv": jax.random.uniform(ks[4], (1, sim_dim), jnp.float32,
                                 -scale, scale),
        "bv": jax.random.uniform(ks[5], (1, 1), jnp.float32,
                                 -scale, scale),
    }


def reference(mid, hig, params):
    """Plain-JAX reference for sanity checking (mirrors the PyTorch forward)."""
    mid_k = jnp.tanh(mid @ params["wk"] + params["bk"])              # (B,N,D)
    hig_q = jnp.tanh(hig @ params["wq"] + params["bq"])              # (B,D)
    w = mid_k * hig_q[:, None, :]                                    # (B,N,D)
    s = jnp.einsum("bnd,d->bn", w, params["wv"][0]) + params["bv"][0, 0]
    p = jax.nn.softmax(s, axis=1)                                    # (B,N)
    new_hig = jnp.sum(p[..., None] * mid, axis=1)                    # (B,D)
    norm = jnp.sqrt(jnp.sum(new_hig ** 2, -1, keepdims=True)) + 1e-8
    return new_hig / norm


if __name__ == "__main__":
    # TODO(synk): Dropout(p=0.4) is modeled as identity (eval-mode semantics).
    B, N, D = 16, 8, 32  # batch, num regions, sim_dim -> tile_b=8, grid=(2,)

    key = jax.random.PRNGKey(0)
    k_mid, k_hig, k_par = jax.random.split(key, 3)

    mid = jax.random.normal(k_mid, (B, N, D), jnp.float32)
    hig = jax.random.normal(k_hig, (B, D), jnp.float32)
    params = init_params(k_par, D)

    out = aggregation_regulator(mid, hig, params)
    out = jax.block_until_ready(out)

    ref = reference(mid, hig, params)
    assert out.shape == (B, D)
    # Slightly looser than 1e-5: approx reciprocal / rsqrt + reassociated
    # v-projection (still well within 2e-4).
    assert jnp.allclose(out, ref, atol=2e-4, rtol=2e-4), "mismatch vs reference"

    print("KERNEL_OK")
</pallas_src>

<mosaic_0001>
module attributes {stable_mosaic.version = 11 : i64} {
  func.func @_agg_reg_kernel(%arg0: i32, %arg1: memref<8x8x32xf32, #tpu.memory_space<vmem>>, %arg2: memref<8x32xf32, #tpu.memory_space<vmem>>, %arg3: memref<32x32xf32, #tpu.memory_space<vmem>>, %arg4: memref<1x32xf32, #tpu.memory_space<vmem>>, %arg5: memref<32x32xf32, #tpu.memory_space<vmem>>, %arg6: memref<1x32xf32, #tpu.memory_space<vmem>>, %arg7: memref<1x32xf32, #tpu.memory_space<vmem>>, %arg8: memref<1x1xf32, #tpu.memory_space<smem>>, %arg9: memref<8x32xf32, #tpu.memory_space<vmem>>) attributes {dimension_semantics = [#tpu.dimension_semantics<parallel>], iteration_bounds = array<i64: 2>, scalar_prefetch = 0 : i64, scratch_operands = 0 : i64, tpu.core_type = #tpu.core_type<tc>, window_params = [{transform_indices = @transform_0, window_bounds = array<i64: 8, 8, 32>}, {transform_indices = @transform_1, window_bounds = array<i64: 8, 32>}, {pipeline_mode = #tpu.pipeline_mode<synchronous>, transform_indices = @transform_2, window_bounds = array<i64: 32, 32>}, {pipeline_mode = #tpu.pipeline_mode<synchronous>, transform_indices = @transform_3, window_bounds = array<i64: 1, 32>}, {pipeline_mode = #tpu.pipeline_mode<synchronous>, transform_indices = @transform_4, window_bounds = array<i64: 32, 32>}, {pipeline_mode = #tpu.pipeline_mode<synchronous>, transform_indices = @transform_5, window_bounds = array<i64: 1, 32>}, {pipeline_mode = #tpu.pipeline_mode<synchronous>, transform_indices = @transform_6, window_bounds = array<i64: 1, 32>}, {transform_indices = @transform_7, window_bounds = array<i64: 1, 1>}, {transform_indices = @transform_8, window_bounds = array<i64: 8, 32>}]} {
    %c0 = arith.constant 0 : index
    %c0_0 = arith.constant 0 : index
    %c0_1 = arith.constant 0 : index
    %0 = vector.load %arg1[%c0, %c0_0, %c0_1] : memref<8x8x32xf32, #tpu.memory_space<vmem>>, vector<8x8x32xf32>
    %c0_2 = arith.constant 0 : index
    %c0_3 = arith.constant 0 : index
    %1 = vector.load %arg2[%c0_2, %c0_3] : memref<8x32xf32, #tpu.memory_space<vmem>>, vector<8x32xf32>
    %2 = vector.shape_cast %0 : vector<8x8x32xf32> to vector<64x32xf32>
    %c0_4 = arith.constant 0 : index
    %c0_5 = arith.constant 0 : index
    %3 = vector.load %arg3[%c0_4, %c0_5] : memref<32x32xf32, #tpu.memory_space<vmem>>, vector<32x32xf32>
    %cst = arith.constant dense<0.000000e+00> : vector<64x32xf32>
    %4 = tpu.matmul %2, %3, %cst {dimension_numbers = #tpu.dot_dimension_numbers<[1], [0], [0], [1], [0, 0, 1, 1], [], []>} : vector<64x32xf32>, vector<32x32xf32>, vector<64x32xf32> -> vector<64x32xf32>
    %c0_6 = arith.constant 0 : index
    %c0_7 = arith.constant 0 : index
    %5 = vector.load %arg4[%c0_6, %c0_7] : memref<1x32xf32, #tpu.memory_space<vmem>>, vector<1x32xf32>
    %6 = vector.broadcast %5 : vector<1x32xf32> to vector<64x32xf32>
    %7 = arith.addf %4, %6 : vector<64x32xf32>
    %8 = math.tanh %7 : vector<64x32xf32>
    %c0_8 = arith.constant 0 : index
    %c0_9 = arith.constant 0 : index
    %9 = vector.load %arg5[%c0_8, %c0_9] : memref<32x32xf32, #tpu.memory_space<vmem>>, vector<32x32xf32>
    %cst_10 = arith.constant dense<0.000000e+00> : vector<8x32xf32>
    %10 = tpu.matmul %1, %9, %cst_10 {dimension_numbers = #tpu.dot_dimension_numbers<[1], [0], [0], [1], [0, 0, 1, 1], [], []>} : vector<8x32xf32>, vector<32x32xf32>, vector<8x32xf32> -> vector<8x32xf32>
    %c0_11 = arith.constant 0 : index
    %c0_12 = arith.constant 0 : index
    %11 = vector.load %arg6[%c0_11, %c0_12] : memref<1x32xf32, #tpu.memory_space<vmem>>, vector<1x32xf32>
    %12 = vector.broadcast %11 : vector<1x32xf32> to vector<8x32xf32>
    %13 = arith.addf %10, %12 : vector<8x32xf32>
    %14 = math.tanh %13 : vector<8x32xf32>
    %c0_13 = arith.constant 0 : index
    %c0_14 = arith.constant 0 : index
    %15 = vector.load %arg7[%c0_13, %c0_14] : memref<1x32xf32, #tpu.memory_space<vmem>>, vector<1x32xf32>
    %16 = vector.broadcast %15 : vector<1x32xf32> to vector<8x32xf32>
    %17 = arith.mulf %14, %16 : vector<8x32xf32>
    %18 = vector.shape_cast %8 : vector<64x32xf32> to vector<8x8x32xf32>
    %19 = vector.shape_cast %17 : vector<8x32xf32> to vector<8x1x32xf32>
    %20 = vector.broadcast %19 : vector<8x1x32xf32> to vector<8x8x32xf32>
    %21 = arith.mulf %18, %20 : vector<8x8x32xf32>
    %cst_15 = arith.constant dense<0.000000e+00> : vector<8x8xf32>
    %22 = vector.multi_reduction <add>, %21, %cst_15 [2] : vector<8x8x32xf32> to vector<8x8xf32>
    %c0_16 = arith.constant 0 : index
    %c0_17 = arith.constant 0 : index
    %23 = memref.load %arg8[%c0_16, %c0_17] : memref<1x1xf32, #tpu.memory_space<smem>>
    %24 = vector.broadcast %23 : f32 to vector<8x8xf32>
    %25 = arith.addf %22, %24 : vector<8x8xf32>
    %cst_18 = arith.constant dense<0xFF800000> : vector<8xf32>
    %26 = vector.multi_reduction <maximumf>, %25, %cst_18 [1] : vector<8x8xf32> to vector<8xf32>
    %27 = vector.shape_cast %26 : vector<8xf32> to vector<8x1xf32>
    %28 = vector.broadcast %27 : vector<8x1xf32> to vector<8x8xf32>
    %29 = arith.subf %25, %28 : vector<8x8xf32>
    %30 = math.exp %29 : vector<8x8xf32>
    %cst_19 = arith.constant dense<0.000000e+00> : vector<8xf32>
    %31 = vector.multi_reduction <add>, %30, %cst_19 [1] : vector<8x8xf32> to vector<8xf32>
    %32 = vector.shape_cast %31 : vector<8xf32> to vector<8x1xf32>
    %33 = tpu.reciprocal %32 {approx = true} : vector<8x1xf32> -> vector<8x1xf32>
    %34 = vector.broadcast %33 : vector<8x1xf32> to vector<8x8xf32>
    %35 = arith.mulf %30, %34 : vector<8x8xf32>
    %36 = vector.shape_cast %35 : vector<8x8xf32> to vector<8x8x1xf32>
    %37 = vector.broadcast %36 : vector<8x8x1xf32> to vector<8x8x32xf32>
    %38 = arith.mulf %37, %0 : vector<8x8x32xf32>
    %cst_20 = arith.constant dense<0.000000e+00> : vector<8x32xf32>
    %39 = vector.multi_reduction <add>, %38, %cst_20 [1] : vector<8x8x32xf32> to vector<8x32xf32>
    %40 = arith.mulf %39, %39 : vector<8x32xf32>
    %cst_21 = arith.constant dense<0.000000e+00> : vector<8xf32>
    %41 = vector.multi_reduction <add>, %40, %cst_21 [1] : vector<8x32xf32> to vector<8xf32>
    %42 = vector.shape_cast %41 : vector<8xf32> to vector<8x1xf32>
    %cst_22 = arith.constant 9.99999996E-13 : f32
    %43 = vector.broadcast %cst_22 : f32 to vector<8x1xf32>
    %44 = arith.addf %42, %43 : vector<8x1xf32>
    %45 = math.rsqrt %44 : vector<8x1xf32>
    %46 = vector.broadcast %45 : vector<8x1xf32> to vector<8x32xf32>
    %47 = arith.mulf %39, %46 : vector<8x32xf32>
    %c0_23 = arith.constant 0 : index
    %c0_24 = arith.constant 0 : index
    %48 = vector.load %arg9[%c0_23, %c0_24] : memref<8x32xf32, #tpu.memory_space<vmem>>, vector<8x32xf32>
    tpu.vector_store %arg9[%c0_23, %c0_24], %47 {strides = array<i32>} : memref<8x32xf32, #tpu.memory_space<vmem>>, vector<8x32xf32>,
    return
  }
  func.func @transform_0(%arg0: i32) -> (i32, i32, i32) {
    %c0_i32 = arith.constant 0 : i32
    %c0_i32_0 = arith.constant 0 : i32
    %c0_i32_1 = arith.constant 0 : i32
    return %arg0, %c0_i32, %c0_i32_0 : i32, i32, i32
  }
  func.func @transform_1(%arg0: i32) -> (i32, i32) {
    %c0_i32 = arith.constant 0 : i32
    %c0_i32_0 = arith.constant 0 : i32
    return %arg0, %c0_i32 : i32, i32
  }
  func.func @transform_2(%arg0: i32) -> (i32, i32) {
    %c0_i32 = arith.constant 0 : i32
    %c0_i32_0 = arith.constant 0 : i32
    %c0_i32_1 = arith.constant 0 : i32
    return %c0_i32, %c0_i32_0 : i32, i32
  }
  func.func @transform_3(%arg0: i32) -> (i32, i32) {
    %c0_i32 = arith.constant 0 : i32
    %c0_i32_0 = arith.constant 0 : i32
    %c0_i32_1 = arith.constant 0 : i32
    return %c0_i32, %c0_i32_0 : i32, i32
  }
  func.func @transform_4(%arg0: i32) -> (i32, i32) {
    %c0_i32 = arith.constant 0 : i32
    %c0_i32_0 = arith.constant 0 : i32
    %c0_i32_1 = arith.constant 0 : i32
    return %c0_i32, %c0_i32_0 : i32, i32
  }
  func.func @transform_5(%arg0: i32) -> (i32, i32) {
    %c0_i32 = arith.constant 0 : i32
    %c0_i32_0 = arith.constant 0 : i32
    %c0_i32_1 = arith.constant 0 : i32
    return %c0_i32, %c0_i32_0 : i32, i32
  }
  func.func @transform_6(%arg0: i32) -> (i32, i32) {
    %c0_i32 = arith.constant 0 : i32
    %c0_i32_0 = arith.constant 0 : i32
    %c0_i32_1 = arith.constant 0 : i32
    return %c0_i32, %c0_i32_0 : i32, i32
  }
  func.func @transform_7(%arg0: i32) -> (i32, i32) {
    %c0_i32 = arith.constant 0 : i32
    %c0_i32_0 = arith.constant 0 : i32
    %c0_i32_1 = arith.constant 0 : i32
    return %c0_i32, %c0_i32_0 : i32, i32
  }
  func.func @transform_8(%arg0: i32) -> (i32, i32) {
    %c0_i32 = arith.constant 0 : i32
    %c0_i32_0 = arith.constant 0 : i32
    return %arg0, %c0_i32 : i32, i32
  }
}

</mosaic_0001>

<bundles_post_ra>
// kernel: tpu_custom_call.1
= control target key start
LH: loop header
LB: loop body
LE: loop exit
PB: predicated region body
PF: predicated region fallthrough
CT: control target
= control target key end

     0   :  { %s2275_s0 = inlined_call_operand.hbm [shape: f32[16,8,32], index: 0, kind: input, shape index: {}]   ;;  %s2276_s1 = inlined_call_operand.hbm [shape: f32[16,32], index: 1, kind: input, shape index: {}]   ;;  %s2277_s2 = inlined_call_operand.hbm [shape: f32[32,32], index: 2, kind: input, shape index: {}]   ;;  %s2278_s3 = inlined_call_operand.vmem [shape: f32[1,32], index: 3, kind: input, shape index: {}]   ;;  %s2279_s4 = inlined_call_operand.hbm [shape: f32[32,32], index: 4, kind: input, shape index: {}]   ;;  %s2280_s5 = inlined_call_operand.vmem [shape: f32[1,32], index: 5, kind: input, shape index: {}]   ;;  %s2281_s6 = inlined_call_operand.vmem [shape: f32[1,32], index: 6, kind: input, shape index: {}]   ;;  %s2282_s7 = inlined_call_operand.<no memory space> [shape: f32[1,1], index: 7, kind: input, shape index: {}]   ;;  %s2283_s8 = inlined_call_operand.hbm [shape: f32[16,32], index: 8, kind: output, shape index: {}]  }
   0x1   :  { %2291 = sst [smem:[#allocation19_spill]] %s2275_s0 }
   0x2   :  { %2292 = sst [smem:[#allocation20_spill]] %s2277_s2 }
   0x3   :  { %2293 = sst [smem:[#allocation21_spill]] %s2279_s4 }
   0x4   :  { %13 = sst [smem:[#allocation2]] %s2282_s7 }
   0x5   :  { %14 = vsyncpa [#allocation4], 0 }
   0x6   :  { %16 = vsyncpa [#allocation4 + $0x1], 0 }
   0x7   :  { %17 = vsyncpa [#allocation7], 0 }
   0x8   :  { %19 = vsyncpa [#allocation7 + $0x1], 0 }
   0x9   :  { %20 = vsyncpa [#allocation10], 0 }
   0xa   :  { %21 = vsyncpa [#allocation5], 0 }
   0xb   :  { %23 = vsyncpa [#allocation5 + $0x1], 0  ;;  %s1803_s29 = smov 0   ;;  %s1805_s30 = smov 0  }
   0xc   :  { %s1807_s9 = smov 0   ;;  %s1809_s10 = smov 0  }
   0xd LB: > { %2294 = sst [smem:[#allocation17_spill]] %s1737_s9  ;;  %s1824_s7 = sadd.s32 4294967295, %s1741_s10   ;;  %s1741_s10 = sphi %s1809_s10, %s2322_s10   ;;  %s1737_s9 = sphi %s1807_s9, %s2319_s9   ;;  %s1733_s30 = sphi %s1805_s30, %s2321_s30   ;;  %s1729_s29 = sphi %s1803_s29, %s2320_s29  }
   0xe   : > { %s1333_s11 = sadd.s32 4294967294, %s1741_s10   ;;  %p49_p0 = scmp.ne.s32.totalorder %s1733_s30, %s1729_s29 }
   0xf   : > { %p2284_p1 = scmp.eq.s32.totalorder %s1824_s7, 0  ;;  %p231_p3 = scmp.eq.s32.totalorder %s1333_s11, 1 }
  0x10   : > { %p1334_p5 = scmp.ge.s32.totalorder %s1741_s10, 1  ;;  %p238_p7 = scmp.lt.s32.totalorder %s1741_s10, 3 }
  0x11   : > { %p1833_p4 = por %p2284_p1, %p49_p0  ;;  %p1838_p6 = por %p231_p3, %p49_p0 }
  0x12   : > { %p1843_p8 = pnand %p1334_p5, %p238_p7  ;;  %s1743_s15 = smov [#allocation8]  }
  0x13   : > { %s2295_s12 = scalar_select %p1833_p4, 1, 0 }
  0x14   : > { %s2296_s13 = scalar_select %p1838_p6, 1, 0 }
  0x15   : > { %s2297_s14 = scalar_select %p1843_p8, 1, 0 }
  0x16   : > { %s250_s16 = sshll.u32 %s1743_s15, 4  ;;  %p1442_p9 = pneg %p1843_p8  ;;  %s1847_s16 = int_to_ptr.vmem [resolvable:$true] %s250_s16 }
  0x17   : > { %s1744_s18 = smov [#allocation9]   ;;  %s2299_s2 = sld [smem:[#allocation20_spill]] }
  0x18   : > { %p1854_p11 = pnand %p1442_p9, %p2284_p1  ;;  %s266_s19 = sshll.u32 %s1744_s18, 4  ;;  %s1858_s19 = int_to_ptr.vmem [resolvable:$true] %s266_s19 }
  0x1a   : > { %p1549_p13 = pneg %p1854_p11 }
  0x1d   : > { %s1547_s22 = scalar_lea.hbm %s2299_s2, 512 }
  0x1e   : > { %p1548_p12 = scmp.ne.s32.totalorder %s2299_s2, %s1547_s22  ;;  %p1554_p5 = scmp.lt.u32.totalorder %s1547_s22, %s2299_s2 }
  0x20   : > { %p1550_p0 = pnand %p1549_p13, %p1548_p12 }
  0x22   : > { %p1551_p3 = pneg %p1550_p0 }
  0x24   : > { %p1556_p7 = pnand %p1554_p5, %p1551_p3 }
  0x26   : > { %1559 = shalt.err (!%p1556_p7)
}
  0x27   : > { %s1560_s27 = scalar_lea.vmem %s1847_s16, 512  ;;  %p1568_p2 = scmp.lt.s32.totalorder %s1847_s16, %s1847_s16 }
  0x28   : > { %p1561_p9 = scmp.ne.s32.totalorder %s1847_s16, %s1560_s27  ;;  %p1569_p12 = scmp.lt.s32.totalorder %s1560_s27, %s1560_s27 }
  0x2a   : > { %p1563_p10 = pnand %p1561_p9, %p1549_p13  ;;  %p1570_p0 = por %p1569_p12, %p1568_p2 }
  0x2c   : > { %p1564_p1 = pneg %p1563_p10 }
  0x2e   : > { %p1571_p6 = pnand %p1570_p0, %p1564_p1 }
  0x30   : > { %1574 = shalt.err (!%p1571_p6)
}
  0x31   : > { %s2285_s28 = smov 128   ;;  %s2286_s11 = smov 8  }
  0x32   : > { %1445 = dma.hbm_to_vmem [thread:$0]  (!%p1854_p11), %s2299_s2, 512, %s1847_s16, [#allocation7], %s2285_s28, %s2285_s28, %s2286_s11  }
  0x33   : > { %s2300_s4 = sld [smem:[#allocation21_spill]] }
  0x39   : > { %s1575_s22 = scalar_lea.hbm %s2300_s4, 512 }
  0x3a   : > { %p1576_p1 = scmp.ne.s32.totalorder %s2300_s4, %s1575_s22  ;;  %p1582_p10 = scmp.lt.u32.totalorder %s1575_s22, %s2300_s4 }
  0x3c   : > { %p1578_p2 = pnand %p1576_p1, %p1549_p13 }
  0x3e   : > { %p1579_p6 = pneg %p1578_p2 }
  0x40   : > { %p1584_p3 = pnand %p1582_p10, %p1579_p6 }
  0x42   : > { %1587 = shalt.err (!%p1584_p3)
}
  0x43   : > { %s1588_s16 = scalar_lea.vmem %s1858_s19, 512  ;;  %p1596_p12 = scmp.lt.s32.totalorder %s1858_s19, %s1858_s19 }
  0x44   : > { %p1589_p5 = scmp.ne.s32.totalorder %s1858_s19, %s1588_s16  ;;  %p1597_p0 = scmp.lt.s32.totalorder %s1588_s16, %s1588_s16 }
  0x46   : > { %p1591_p7 = pnand %p1589_p5, %p1549_p13  ;;  %p1598_p1 = por %p1597_p0, %p1596_p12 }
  0x48   : > { %p1592_p9 = pneg %p1591_p7 }
  0x4a   : > { %p1599_p2 = pnand %p1598_p1, %p1592_p9 }
  0x4c   : > { %1602 = shalt.err (!%p1599_p2)
}
  0x4d   : > { %1448 = dma.hbm_to_vmem [thread:$0]  (!%p1854_p11), %s2300_s4, 512, %s1858_s19, [#allocation10], %s2285_s28, %s2285_s28, %s2286_s11  }
  0x4e   : > { %s1919_s17 = sadd.s32 1, %s1741_s10   ;;  %s36_s18 = sadd.s32 1, %s1737_s9 }
  0x4f   : > { %s33_s20 = ssub.s32 %s1741_s10, %s1919_s17  ;;  %p43_p13 = scmp.ne.s32.totalorder %s1737_s9, %s1733_s30 }
  0x50   : > { %p34_p6 = scmp.eq.s32.totalorder %s33_s20, 0  ;;  %p44_p10 = scmp.eq.s32.totalorder %s1741_s10, 0 }
  0x51   : > { %p2301_p3 = scmp.eq.s32.totalorder %s1824_s7, 1  ;;  %p1462_p7 = scmp.lt.s32.totalorder %s1741_s10, 2 }
  0x52   : > { %s1935_s22 = scalar_select %p34_p6, %s1737_s9, %s36_s18  }
  0x53   : > { %p1929_p5 = por %p2301_p3, %p43_p13  ;;  %p45_p9 = por %p44_p10, %p43_p13 }
  0x54   : > { %2303 = sst [smem:[#allocation18_spill]] %s1935_s22  ;;  %s1938_s23 = sand.u32 1, %s1737_s9  }
  0x55   : > { %s2302_s21 = scalar_select %p1929_p5, 1, 0 }
  0x56   : > { %s1338_s19 = sshll.u32 %s1938_s23, 6  ;;  %s1365_s24 = sshll.u32 %s1741_s10, 10 }
  0x57   : > { %s2304_s0 = sld [smem:[#allocation19_spill]]  ;;  %s293_s27 = scalar_lea.vmem [#allocation3], %s1338_s19 }
  0x58   : > { %s300_s15 = sshll.u32 %s293_s27, 4  ;;  %p1949_p11 = pnand %p1462_p7, %p45_p9  ;;  %s1947_s15 = int_to_ptr.vmem [resolvable:$true] %s300_s15 }
  0x59   : > { %s1341_s28 = sshll.u32 %s1938_s23, 3  ;;  %s290_s11 = scalar_lea.sflag [#allocation4], %s1938_s23 }
  0x5a   : > { %p1605_p0 = pneg %p1949_p11 }
  0x5d   : > { %s1945_s16 = scalar_lea.hbm %s2304_s0, %s1365_s24  ;;  %s1608_s26 = scalar_lea.hbm %s2304_s0, 2048 }
  0x5e   : > { %s1603_s25 = scalar_lea.hbm %s1945_s16, 1024  ;;  %p1609_p13 = scmp.lt.u32.totalorder %s1945_s16, %s2304_s0 }
  0x5f   : > { %p1604_p12 = scmp.ne.s32.totalorder %s1945_s16, %s1603_s25  ;;  %p1610_p6 = scmp.lt.u32.totalorder %s1608_s26, %s1603_s25 }
  0x60   : > { %p1612_p3 = scmp.lt.u32.totalorder %s1603_s25, %s1945_s16 }
  0x61   : > { %p1606_p1 = pnand %p1605_p0, %p1604_p12  ;;  %p1611_p10 = por %p1610_p6, %p1609_p13 }
  0x63   : > { %p1607_p2 = pneg %p1606_p1  ;;  %p1613_p7 = por %p1612_p3, %p1611_p10 }
  0x65   : > { %p1614_p9 = pnand %p1613_p7, %p1607_p2 }
  0x67   : > { %1617 = shalt.err (!%p1614_p9)
}
  0x68   : > { %s1618_s20 = scalar_lea.vmem %s1947_s15, 1024  ;;  %s1747_s19 = smov [#allocation3]  }
  0x69   : > { %p1619_p12 = scmp.ne.s32.totalorder %s1947_s15, %s1618_s20  ;;  %s1623_s24 = sshll.u32 %s1747_s19, 4  ;;  %s1624_s24 = int_to_ptr.vmem [resolvable:$false] %s1623_s24 }
  0x6a   : > { %s1625_s2 = scalar_lea.vmem %s1624_s24, 2048  ;;  %p1626_p4 = scmp.lt.s32.totalorder %s1947_s15, %s1624_s24 }
  0x6b   : > { %p1621_p1 = pnand %p1619_p12, %p1605_p0  ;;  %p1627_p13 = scmp.lt.s32.totalorder %s1625_s2, %s1618_s20 }
  0x6d   : > { %p1622_p5 = pneg %p1621_p1  ;;  %p1628_p6 = por %p1627_p13, %p1626_p4 }
  0x6f   : > { %p1629_p10 = pnand %p1628_p6, %p1622_p5 }
  0x71   : > { %1632 = shalt.err (!%p1629_p10)
}
  0x72   : > { %s2306_s25 = smov 8   ;;  %s2307_s26 = smov 128  }
  0x73   : > { %1452 = dma.hbm_to_vmem [thread:$0]  (!%p1949_p11), %s1945_s16, 1024, %s1947_s15, %s290_s11, %s2307_s26, %s2307_s26, %s2306_s25  }
  0x74   : > { %s1342_s27 = sshll.u32 %s1741_s10, 7  ;;  %s314_s2 = scalar_lea.vmem [#allocation6], %s1341_s28 }
  0x75   : > { %s1990_s24 = scalar_lea.hbm %s2276_s1, %s1342_s27  ;;  %s321_s0 = sshll.u32 %s314_s2, 4  ;;  %s322_s0 = int_to_ptr.vmem [resolvable:$true] %s321_s0 }
  0x76   : > { %s2308_s4 = sand.u32 1, %s1741_s10   ;;  %s1633_s9 = scalar_lea.hbm %s1990_s24, 128 }
  0x77   : > { %s311_s22 = scalar_lea.sflag [#allocation7], %s2308_s4  ;;  %p1634_p4 = scmp.ne.s32.totalorder %s1990_s24, %s1633_s9 }
  0x78   : > { %s1638_s15 = scalar_lea.hbm %s2276_s1, 256  ;;  %p1639_p3 = scmp.lt.u32.totalorder %s1990_s24, %s2276_s1 }
  0x79   : > { %p1636_p5 = pnand %p1634_p4, %p1605_p0  ;;  %p1640_p7 = scmp.lt.u32.totalorder %s1638_s15, %s1633_s9 }
  0x7a   : > { %p1642_p12 = scmp.lt.u32.totalorder %s1633_s9, %s1990_s24 }
  0x7b   : > { %p1637_p2 = pneg %p1636_p5  ;;  %p1641_p9 = por %p1640_p7, %p1639_p3 }
  0x7d   : > { %p1643_p1 = por %p1642_p12, %p1641_p9 }
  0x7f   : > { %p1644_p13 = pnand %p1643_p1, %p1637_p2 }
  0x81   : > { %1647 = shalt.err (!%p1644_p13)
}
  0x82   : > { %s1648_s4 = scalar_lea.vmem %s322_s0, 128  ;;  %s1748_s28 = smov [#allocation6]  }
  0x83   : > { %p1649_p6 = scmp.ne.s32.totalorder %s322_s0, %s1648_s4  ;;  %s1653_s26 = sshll.u32 %s1748_s28, 4  ;;  %s1654_s26 = int_to_ptr.vmem [resolvable:$false] %s1653_s26 }
  0x84   : > { %s1655_s27 = scalar_lea.vmem %s1654_s26, 256  ;;  %p1656_p5 = scmp.lt.s32.totalorder %s322_s0, %s1654_s26 }
  0x85   : > { %p1651_p10 = pnand %p1649_p6, %p1605_p0  ;;  %p1657_p8 = scmp.lt.s32.totalorder %s1655_s27, %s1648_s4 }
  0x87   : > { %p1652_p4 = pneg %p1651_p10  ;;  %p1658_p3 = por %p1657_p8, %p1656_p5 }
  0x89   : > { %p1659_p7 = pnand %p1658_p3, %p1652_p4 }
  0x8b   : > { %1662 = shalt.err (!%p1659_p7)
}
  0x8c   : > { %1455 = dma.hbm_to_vmem [thread:$0]  (!%p1949_p11), %s1990_s24, 128, %s322_s0, %s311_s22  }
  0x8d   : > { %p2309_p2 = scmp.ne.s32.totalorder %s2297_s14, 0 }
  0x8e   : > { %s2018_s9 = sand.u32 (!%p2309_p2), 1, %s1733_s30   ;;  %p2310_p8 = scmp.ne.s32.totalorder (!%p2309_p2), %s2295_s12, 0 }
  0x8f   : > { %330 = sbr.rel (%p2309_p2) target bundleno = 1400 (0x578), region = 52  ;;  %s1344_s19 = sshll.u32 (!%p2309_p2), %s2018_s9, 6 }
  0x90   : > { %s333_s20 = scalar_lea.sflag (!%p2309_p2), [#allocation4], %s2018_s9  ;;  %s2022_s2 = scalar_lea.vmem (!%p2309_p2), [#allocation3], %s1344_s19 }
  0x96   : > { %1708 = dma.done.wait (%p2310_p8), %s333_s20, 1024  }
  0x97   : > { %1710 = vsyncadd (%p2310_p8), %s333_s20, 4294966272  ;;  %s341_s0 = sand.u32 1, %s1824_s7   ;;  %s1345_s14 = sshll.u32 %s2018_s9, 3 }
  0x98   : > { %s342_s22 = scalar_lea.sflag [#allocation7], %s341_s0  ;;  %s2032_s18 = scalar_lea.vmem [#allocation6], %s1345_s14 }
  0x99   : > { %1712 = dma.done.wait (%p2310_p8), %s342_s22, 128  }
  0x9a   : > { %1714 = vsyncadd (%p2310_p8), %s342_s22, 4294967168  ;;  %p2311_p11 = scmp.eq.s32.totalorder %s1824_s7, 0 }
  0x9c   : > { %1716 = dma.done.wait (%p2311_p11), [#allocation7], 512   ;;  %p2312_p0 = pmov %p2311_p11 }
  0x9e   : > { %1718 = vsyncadd (%p2312_p0), [#allocation7], 4294966784  ;;  %p2313_p9 = pmov %p2312_p0 }
  0x9f   : > { %p2314_p12 = pmov %p2312_p0 }
  0xa0   : > { %1720 = dma.done.wait (%p2313_p9), [#allocation10], 512  }
  0xa1   : > { %1722 = vsyncadd (%p2314_p12), [#allocation10], 4294966784  ;;  %v1749_v0 = vmov 0.0|0.0   ;;  %vm1750_vm0 = vmmov 0   ;;  %v1751_v1 = vmov 0.0   ;;  %v401_v2 = vld [vmem:[#allocation8] sm:$0xff]  ;;  %v648_v33 = vlaneseq }
  0xa2   : > { %1422 = vmatprep.subr.bf16.mxu1 %v1749_v0  ;;  %1411 = vmatprep.mubr.msk.f32.mxu1 %vm1750_vm0, %v1751_v1  ;;  %v402_v3 = vld [vmem:[#allocation8 + $0x8] sm:$0xff]  ;;  %v550_v4 = vld [vmem:[#allocation9] sm:$0xff]  ;;  %vm412_vm1 = vcmask 261120   ;;  %v403_v7 = vld [vmem:[#allocation8 + $0x10] sm:$0xff]  ;;  %v1752_v31 = vmov 1966171168  }
  0xa3   : > { %v1414_v5 = vpack.c.bf16 %v402_v3, %v401_v2  ;;  %v551_v6 = vld [vmem:[#allocation9 + $0x8] sm:$0xff]  ;;  %v404_v8 = vld [vmem:[#allocation8 + $0x18] sm:$0xff]  ;;  %v552_v11 = vld [vmem:[#allocation9 + $0x10] sm:$0xff]  ;;  %v646_v32 = vunpack.c.l.s4 %v1752_v31  ;;  %v2095_v40 = vshrl.u32 %v648_v33, 7  ;;  %s765_s25 = sld [smem:[#allocation2]]  ;;  %vm817_vm2 = vcmask 1041409  }
  0xa4   : > { %v1423_v9 = vpack.c.bf16 %v551_v6, %v550_v4  ;;  %v1418_v10 = vpack.c.bf16 %v404_v8, %v403_v7  ;;  %v553_v12 = vld [vmem:[#allocation9 + $0x18] sm:$0xff]  ;;  %v2047_v13 = vld [vmem:[%s2022_s2] sm:$0xff]  ;;  %v2056_v17 = vld [vmem:[%s2022_s2 + $0x10] sm:$0xff]  ;;  %vm819_vm3 = vcmask 1042434   ;;  %vm821_vm4 = vcmask 1043459   ;;  %s1362_s4 = sshll.u32 %s1824_s7, 7 }
  0xa5   : > { %1415 = vmatprep.subr.bf16.mxu0 %v1414_v5  ;;  %1391 = vmatprep.mubr.msk.f32.mxu0 %vm412_vm1, %v2047_v13  ;;  %v1426_v14 = vpack.c.bf16 %v553_v12, %v552_v11  ;;  %v400_v15 = vld [vmem:[%s2032_s18] sm:$0xff]  ;;  %v2064_v18 = vld [vmem:[%s2022_s2 + $0x18] sm:$0xff]  ;;  %v2077_v21 = vld [vmem:[%s2022_s2 + $0x30] sm:$0xff]  ;;  %v647_v39 = vunpack.c.0.s8 %v646_v32  ;;  %v2102_v54 = vsub.s32 0, %v2095_v40  ;;  %vm823_vm5 = vcmask 1044484   ;;  %s390_s28 = scalar_lea.vmem [#allocation11], %s1345_s14  ;;  %s2229_s20 = scalar_lea.hbm %s2283_s8, %s1362_s4 }
  0xa6   : > { %1424 = vmatpush3.bf16.msra.mxu1 %v1423_v9  ;;  %1417 = vmatpush3.bf16.msra.mxu0 %v1414_v5  ;;  %v2053_v16 = vld [vmem:[%s2022_s2 + $0x8] sm:$0xff]  ;;  %v2067_v19 = vld [vmem:[%s2022_s2 + $0x20] sm:$0xff]  ;;  %v2084_v22 = vld [vmem:[%s2022_s2 + $0x38] sm:$0xff]  ;;  %vm825_vm6 = vcmask 1045509   ;;  %vm827_vm7 = vcmask 1046534   ;;  %vm829_vm8 = vcmask 1047559  }
  0xa7   : > { %1425 = vmatprep.subr.bf16.mxu1 %v1749_v0  ;;  %1419 = vmatprep.subr.bf16.mxu0 %v1418_v10  ;;  %v2074_v20 = vld [vmem:[%s2022_s2 + $0x28] sm:$0xff]  ;;  %v1358_v23 = vld [vmem:[%s2280_s5] ss:$0 sm:$0xff]  ;;  %v650_v47 = vsub.s32 %v647_v39, %v2095_v40  ;;  %vm832_vm9 = vcmask 64512   ;;  %s1221_s26 = sshll.u32 %s390_s28, 4  ;;  %s1208_s7 = scalar_lea.sflag [#allocation5], %s2018_s9  ;;  %s2231_s26 = int_to_ptr.vmem [resolvable:$true] %s1221_s26 }
  0xa8   : > { %v1349_v29 = vld [vmem:[%s2278_s3] ss:$0 sm:$0xff]  ;;  %s1663_s2 = scalar_lea.vmem %s2231_s26, 128  ;;  %p2315_p13 = scmp.ne.s32.totalorder %s2302_s21, 0 }
  0xa9   : > { %v1360_v45 = vld [vmem:[%s2281_s6] ss:$0 sm:$0xff]  ;;  %p1664_p1 = scmp.ne.s32.totalorder %s2231_s26, %s1663_s2  ;;  %s1754_s0 = smov [#allocation11]  }
  0xaa   : > { %1427 = vmatpush3.bf16.msra.mxu1 %v1426_v14  ;;  %1421 = vmatpush3.bf16.msra.mxu0 %v1418_v10  ;;  %s1667_s14 = sshll.u32 %s1754_s0, 4  ;;  %s1668_s14 = int_to_ptr.vmem [resolvable:$false] %s1667_s14 }
  0xab   : > { %p1665_p6 = pnand %p1664_p1, %p2315_p13  ;;  %s1669_s22 = scalar_lea.vmem %s1668_s14, 256 }
  0xac   : > { %p1670_p4 = scmp.lt.s32.totalorder %s2231_s26, %s1668_s14  ;;  %p1671_p5 = scmp.lt.s32.totalorder %s1669_s22, %s1663_s2 }
  0xad   : > { %1412 = vmatmul.mubr.msk.f32.vlgmr.msra.gmra.mrb[0].mxu1 %vm412_vm1, %v400_v15  ;;  %1392 = vmatmul.mubr.msk.f32.vlgmr.msra.gmra.mrb[0].mxu0 %vm412_vm1, %v2053_v16  ;;  %p1666_p10 = pneg %p1665_p6 }
  0xae   : > { %1394 = vmatprep.mubr.msk.f32.mxu0 %vm412_vm1, %v2056_v17  ;;  %p1672_p3 = por %p1671_p5, %p1670_p4 }
  0xb0   : > { %p1673_p7 = pnand %p1672_p3, %p1666_p10 }
  0xb1   : > { %1395 = vmatmul.mubr.msk.f32.gmra.mrb[2].mxu0 %vm412_vm1, %v2064_v18 }
  0xb2   : > { %1397 = vmatprep.mubr.msk.f32.mxu0 %vm412_vm1, %v2067_v19 }
  0xb5   : > { %1398 = vmatmul.mubr.msk.f32.gmra.mrb[4].mxu0 %vm412_vm1, %v2074_v20 }
  0xb6   : > { %1400 = vmatprep.mubr.msk.f32.mxu0 %vm412_vm1, %v2077_v21 }
  0xb9   : > { %1401 = vmatmul.mubr.msk.f32.gmra.mrb[6].mxu0 %vm412_vm1, %v2084_v22 }
 0x180   : > { %v630_v24 = vpop.f32.mrb[0].mxu1  ;;  %v1393_v25 = vpop.f32.mrb[0].mxu0 }
 0x181   : > { %v631_v26 = vadd.f32 %v1358_v23, %v630_v24  ;;  %v1413_v27 = vpop.f32.mrb[1].mxu1  ;;  %v503_v28 = vpop.f32.mrb[1].mxu0  ;;  %v509_v34 = vadd.f32 %v1393_v25, %v1349_v29 }
 0x182   : > { %v504_v36 = vadd.f32 %v1349_v29, %v503_v28 }
 0x183   : > { %1509 = vtanh.f32 %v631_v26 }
 0x184   : > { %v1396_v30 = vpop.f32.mrb[2].mxu0  ;;  %1511 = vtanh.f32 %v509_v34 }
 0x185   : > { %v513_v35 = vpop.f32.mrb[3].mxu0  ;;  %v519_v41 = vadd.f32 %v1396_v30, %v1349_v29  ;;  %1513 = vtanh.f32 %v504_v36 }
 0x186   : > { %v514_v37 = vadd.f32 %v1349_v29, %v513_v35 }
 0x188   : > { %v1399_v38 = vpop.f32.mrb[4].mxu0  ;;  %1515 = vtanh.f32 %v514_v37 }
 0x189   : > { %v523_v42 = vpop.f32.mrb[5].mxu0  ;;  %v529_v43 = vadd.f32 %v1399_v38, %v1349_v29 }
 0x18a   : > { %v524_v44 = vadd.f32 %v1349_v29, %v523_v42 }
 0x18c   : > { %1517 = vtanh.f32 %v524_v44  ;;  %v1402_v46 = vpop.f32.mrb[6].mxu0 }
 0x18d   : > { %v1510_v48 = vpop.eup %1509  ;;  %1519 = vtanh.f32 %v519_v41  ;;  %v539_v49 = vadd.f32 %v1402_v46, %v1349_v29  ;;  %v533_v50 = vpop.f32.mrb[7].mxu0  ;;  %v766_v46 = vstv %s765_s25 }
 0x18e   : > { %1521 = vtanh.f32 %v529_v43  ;;  %v534_v51 = vadd.f32 %v1349_v29, %v533_v50  ;;  %v642_v52 = vmul.f32 %v1510_v48, %v1360_v45  ;;  %v1512_v59 = vpop.eup %1511  ;;  %v784_v45 = vand.u32 127, %v648_v33 }
 0x18f   : > { %1523 = vtanh.f32 %v539_v49  ;;  %v1514_v60 = vpop.eup %1513 }
 0x190   : > { %1525 = vtanh.f32 %v534_v51  ;;  %v651_v53 = vrot.slane %v642_v52, %v650_v47  ;;  %v644_v55 = vcombine.high %v642_v52, %v642_v52  ;;  %v2122_v49 = vsub.s32 %v784_v45, %v2095_v40 }
 0x191   : > { %v863_v45 = vsub.s32 6, %v2095_v40 }
 0x192   : > { %v667_v56 = vrot.slane %v651_v53, %v650_v47  ;;  %v659_v57 = vcombine.high %v651_v53, %v651_v53  ;;  %v658_v58 = vrot.slane %v644_v55, %v650_v47  ;;  %v1516_v1 = vpop.eup %1515 }
 0x194   : > { %v696_v61 = vrot.slane %v667_v56, %v2102_v54  ;;  %v689_v62 = vcombine.high %v667_v56, %v667_v56  ;;  %v681_v63 = vrot.slane %v659_v57, %v650_v47  ;;  %v674_v0 = vrot.slane %v658_v58, %v650_v47 }
 0x195   : > { %v660_v2 = vcombine.high %v658_v58, %v658_v58 }
 0x196   : > { %v1518_v3 = vpop.eup %1517  ;;  %v733_v4 = vmul.f32 %v1514_v60, %v696_v61  ;;  %v704_v5 = vrot.slane %v689_v62, %v2102_v54  ;;  %v700_v6 = vrot.slane %v681_v63, %v2102_v54  ;;  %v691_v7 = vcombine.high %v681_v63, %v681_v63 }
 0x197   : > { %v1520_v8 = vpop.eup %1519  ;;  %v712_v9 = vrot.slane %v674_v0, %v2102_v54  ;;  %v688_v10 = vrot.slane %v660_v2, %v650_v47  ;;  %v690_v11 = vcombine.high %v674_v0, %v674_v0 }
 0x198   : > { %v1522_v12 = vpop.eup %1521  ;;  %v741_v14 = vsel %vm412_vm1, %v733_v4, 0.0  ;;  %v735_v15 = vmul.f32 %v1516_v1, %v704_v5  ;;  %v734_v23 = vmul.f32 %v1512_v59, %v700_v6  ;;  %v708_v24 = vrot.slane %v691_v7, %v2102_v54 }
 0x199   : > { %v1524_v25 = vpop.eup %1523  ;;  %742 = vadd.xlane.f32.xlu0 %v741_v14  ;;  %v737_v26 = vmul.f32 %v1518_v3, %v712_v9  ;;  %v716_v27 = vrot.slane %v688_v10, %v2102_v54  ;;  %v720_v28 = vrot.slane %v690_v11, %v2102_v54  ;;  %v692_v29 = vcombine.high %v688_v10, %v688_v10 }
 0x19a   : > { %v1526_v30 = vpop.eup %1525  ;;  %v747_v31 = vsel %vm412_vm1, %v735_v15, 0.0  ;;  %v736_v32 = vmul.f32 %v1520_v8, %v708_v24  ;;  %v744_v37 = vsel %vm412_vm1, %v734_v23, 0.0  ;;  %v1753_v24 = vmov 0  }
 0x19b   : > { %748 = vadd.xlane.f32.xlu1 %v747_v31  ;;  %v738_v34 = vmul.f32 %v1522_v12, %v716_v27  ;;  %v739_v35 = vmul.f32 %v1526_v30, %v720_v28  ;;  %v724_v36 = vrot.slane %v692_v29, %v2102_v54  ;;  %v753_v41 = vsel %vm412_vm1, %v737_v26, 0.0  ;;  %1508 = vset.pattern.permute.xlu0 %v1753_v24 }
 0x19c   : > { %v750_v39 = vsel %vm412_vm1, %v736_v32, 0.0  ;;  %1507 = vset.pattern.permute.xlu1 %v1753_v24  ;;  %v847_v26 = vsub.s32 2, %v2095_v40  ;;  %v851_v27 = vsub.s32 3, %v2095_v40  ;;  %v855_v32 = vsub.s32 4, %v2095_v40 }
 0x19d   : > { %745 = vadd.xlane.f32.xlu0 %v744_v37  ;;  %v740_v38 = vmul.f32 %v1524_v25, %v724_v36  ;;  %v756_v42 = vsel %vm412_vm1, %v738_v34, 0.0  ;;  %v759_v43 = vsel %vm412_vm1, %v739_v35, 0.0  ;;  %v843_v25 = vsub.s32 1, %v2095_v40 }
 0x19f   : > { %751 = vadd.xlane.f32.xlu1 %v750_v39  ;;  %v762_v44 = vsel %vm412_vm1, %v740_v38, 0.0 }
 0x1a1   : > { %754 = vadd.xlane.f32.xlu0 %v753_v41  ;;  %v859_v41 = vsub.s32 5, %v2095_v40 }
 0x1a3   : > { %757 = vadd.xlane.f32.xlu1 %v756_v42 }
 0x1a5   : > { %760 = vadd.xlane.f32.xlu0 %v759_v43 }
 0x1a7   : > { %763 = vadd.xlane.f32.xlu1 %v762_v44 }
 0x226   : > { %v743_v47 = vpop.xlane.xlu0 %742 }
 0x227   : > { %v767_v50 = vadd.f32 %v766_v46, %v743_v47 }
 0x228   : > { %v749_v48 = vpop.xlane.xlu1 %748 }
 0x229   : > { %v769_v51 = vadd.f32 %v766_v46, %v749_v48  ;;  %v788_v56 = vrot.slane %v767_v50, %v2122_v49 }
 0x22a   : > { %v746_v52 = vpop.xlane.xlu0 %745 }
 0x22b   : > { %v768_v53 = vadd.f32 %v766_v46, %v746_v52  ;;  %v796_v33 = vrot.slane %v769_v51, %v2122_v49 }
 0x22c   : > { %v752_v55 = vpop.xlane.xlu1 %751 }
 0x22d   : > { %v792_v57 = vrot.slane %v768_v53, %v2122_v49  ;;  %v770_v58 = vadd.f32 %v766_v46, %v752_v55 }
 0x22e   : > { %v755_v59 = vpop.xlane.xlu0 %754 }
 0x22f   : > { %v818_v60 = vsel %vm817_vm2, %v792_v57, %v788_v56  ;;  %v800_v61 = vrot.slane %v770_v58, %v2122_v49  ;;  %v771_v62 = vadd.f32 %v766_v46, %v755_v59 }
 0x230   : > { %v820_v63 = vsel %vm819_vm3, %v796_v33, %v818_v60  ;;  %v758_v0 = vpop.xlane.xlu1 %757 }
 0x231   : > { %v822_v1 = vsel %vm821_vm4, %v800_v61, %v820_v63  ;;  %v804_v2 = vrot.slane %v771_v62, %v2122_v49  ;;  %v772_v3 = vadd.f32 %v766_v46, %v758_v0 }
 0x232   : > { %v761_v4 = vpop.xlane.xlu0 %760 }
 0x233   : > { %v824_v5 = vsel %vm823_vm5, %v804_v2, %v822_v1  ;;  %v808_v6 = vrot.slane %v772_v3, %v2122_v49  ;;  %v773_v7 = vadd.f32 %v766_v46, %v761_v4 }
 0x234   : > { %v764_v8 = vpop.xlane.xlu1 %763 }
 0x235   : > { %v812_v9 = vrot.slane %v773_v7, %v2122_v49  ;;  %v774_v10 = vadd.f32 %v766_v46, %v764_v8  ;;  %v826_v11 = vsel %vm825_vm6, %v808_v6, %v824_v5 }
 0x237   : > { %v816_v12 = vrot.slane %v774_v10, %v2122_v49  ;;  %v828_v14 = vsel %vm827_vm7, %v812_v9, %v826_v11 }
 0x239   : > { %v830_v15 = vsel %vm829_vm8, %v816_v12, %v828_v14 }
 0x23a   : > { %v833_v23 = vsel %vm832_vm9, %v830_v15, -inf }
 0x23b   : > { %834 = vmax.xlane.f32.xlu0 %v833_v23 }
 0x2c8   : > { %v835_v28 = vpop.xlane.xlu0 %834 }
 0x2c9   : > { %v840_v29 = vrot.slane %v835_v28, %v2102_v54  ;;  %v844_v30 = vrot.slane %v835_v28, %v843_v25  ;;  %v848_v31 = vrot.slane %v835_v28, %v847_v26  ;;  %v852_v34 = vrot.slane %v835_v28, %v851_v27 }
 0x2ca   : > { %v856_v42 = vrot.slane %v835_v28, %v855_v32  ;;  %v860_v46 = vrot.slane %v835_v28, %v859_v41 }
 0x2cb   : > { %v877_v35 = vsub.f32 %v767_v50, %v840_v29  ;;  %v878_v36 = vsub.f32 %v768_v53, %v844_v30  ;;  %v879_v37 = vsub.f32 %v769_v51, %v848_v31  ;;  %v880_v43 = vsub.f32 %v770_v58, %v852_v34 }
 0x2cc   : > { %v881_v47 = vsub.f32 %v771_v62, %v856_v42  ;;  %v867_v50 = vsub.s32 7, %v2095_v40  ;;  %v864_v51 = vrot.slane %v835_v28, %v863_v45  ;;  %v882_v52 = vsub.f32 %v772_v3, %v860_v46 }
 0x2cd   : > { %v885_v38 = vmul.f32 1.442695, %v877_v35  ;;  %v887_v39 = vmul.f32 1.442695, %v878_v36  ;;  %v889_v44 = vmul.f32 1.442695, %v879_v37 }
 0x2ce   : > { %v891_v48 = vmul.f32 1.442695, %v880_v43  ;;  %v893_v53 = vmul.f32 1.442695, %v881_v47  ;;  %v868_v57 = vrot.slane %v835_v28, %v867_v50  ;;  %v883_v58 = vsub.f32 %v773_v7, %v864_v51 }
 0x2cf   : > { %1527 = vpow2.f32 %v885_v38  ;;  %v895_v33 = vmul.f32 1.442695, %v882_v52 }
 0x2d0   : > { %1529 = vpow2.f32 %v887_v39  ;;  %v884_v60 = vsub.f32 %v774_v10, %v868_v57  ;;  %v897_v61 = vmul.f32 1.442695, %v883_v58 }
 0x2d1   : > { %1531 = vpow2.f32 %v889_v44 }
 0x2d2   : > { %1533 = vpow2.f32 %v891_v48  ;;  %v899_v63 = vmul.f32 1.442695, %v884_v60 }
 0x2d3   : > { %1535 = vpow2.f32 %v893_v53 }
 0x2d4   : > { %1537 = vpow2.f32 %v895_v33 }
 0x2d5   : > { %1539 = vpow2.f32 %v897_v61 }
 0x2d6   : > { %1541 = vpow2.f32 %v899_v63 }
 0x2d9   : > { %v1528_v55 = vpop.eup %1527 }
 0x2da   : > { %v1530_v56 = vpop.eup %1529  ;;  %910 = vperm.xlu1 %1507, %v1528_v55  }
 0x2db   : > { %913 = vperm.xlu0 %1508, %v1530_v56   ;;  %v1532_v59 = vpop.eup %1531 }
 0x2dc   : > { %v1534_v62 = vpop.eup %1533 }
 0x2dd   : > { %v1536_v0 = vpop.eup %1535 }
 0x2de   : > { %916 = vperm.xlu1 %1507, %v1532_v59   ;;  %v1538_v1 = vpop.eup %1537 }
 0x2df   : > { %v1540_v2 = vpop.eup %1539 }
 0x2e0   : > { %v1542_v3 = vpop.eup %1541 }
 0x2e2   : > { %919 = vperm.xlu1 %1507, %v1534_v62  }
 0x2e6   : > { %922 = vperm.xlu1 %1507, %v1536_v0  }
 0x2ea   : > { %925 = vperm.xlu1 %1507, %v1538_v1  }
 0x2ee   : > { %928 = vperm.xlu1 %1507, %v1540_v2  }
 0x2f2   : > { %931 = vperm.xlu1 %1507, %v1542_v3  }
 0x359   : > { %v911_v4 = vpop.permute.xlu1 %910 }
 0x35a   : > { %v914_v8 = vpop.permute.xlu0 %913  ;;  %v936_v11 = vrot.slane %v911_v4, %v2122_v49 }
 0x35b   : > { %v940_v10 = vrot.slane %v914_v8, %v2122_v49 }
 0x35d   : > { %v917_v5 = vpop.permute.xlu1 %916  ;;  %v965_v24 = vsel %vm817_vm2, %v940_v10, %v936_v11 }
 0x35e   : > { %v944_v12 = vrot.slane %v917_v5, %v2122_v49 }
 0x360   : > { %v966_v29 = vsel %vm819_vm3, %v944_v12, %v965_v24 }
 0x361   : > { %v920_v6 = vpop.permute.xlu1 %919 }
 0x362   : > { %v948_v14 = vrot.slane %v920_v6, %v2122_v49 }
 0x364   : > { %v967_v31 = vsel %vm821_vm4, %v948_v14, %v966_v29 }
 0x365   : > { %v923_v7 = vpop.permute.xlu1 %922 }
 0x366   : > { %v952_v15 = vrot.slane %v923_v7, %v2122_v49 }
 0x368   : > { %v968_v34 = vsel %vm823_vm5, %v952_v15, %v967_v31 }
 0x369   : > { %v926_v9 = vpop.permute.xlu1 %925 }
 0x36a   : > { %v956_v28 = vrot.slane %v926_v9, %v2122_v49 }
 0x36c   : > { %v969_v36 = vsel %vm825_vm6, %v956_v28, %v968_v34 }
 0x36d   : > { %v929_v23 = vpop.permute.xlu1 %928 }
 0x36e   : > { %v960_v30 = vrot.slane %v929_v23, %v2122_v49 }
 0x370   : > { %v970_v38 = vsel %vm827_vm7, %v960_v30, %v969_v36 }
 0x371   : > { %v932_v35 = vpop.permute.xlu1 %931 }
 0x372   : > { %v964_v37 = vrot.slane %v932_v35, %v2122_v49 }
 0x374   : > { %v971_v39 = vsel %vm829_vm8, %v964_v37, %v970_v38 }
 0x375   : > { %v973_v42 = vsel %vm832_vm9, %v971_v39, 0.0 }
 0x376   : > { %974 = vadd.xlane.f32.xlu1 %v973_v42 }
 0x403   : > { %v975_v43 = vpop.xlane.xlu1 %974 }
 0x404   : > { %1543 = vrcp.f32 %v975_v43 }
 0x40e   : > { %v1544_v44 = vpop.eup %1543 }
 0x40f   : > { %v981_v46 = vrot.slane %v1544_v44, %v2102_v54  ;;  %v985_v48 = vrot.slane %v1544_v44, %v843_v25  ;;  %v989_v49 = vrot.slane %v1544_v44, %v847_v26  ;;  %v993_v53 = vrot.slane %v1544_v44, %v851_v27 }
 0x410   : > { %v997_v58 = vrot.slane %v1544_v44, %v855_v32  ;;  %v1001_v25 = vrot.slane %v1544_v44, %v859_v41  ;;  %v1005_v26 = vrot.slane %v1544_v44, %v863_v45  ;;  %v1009_v27 = vrot.slane %v1544_v44, %v867_v50 }
 0x411   : > { %v1018_v47 = vmul.f32 %v1528_v55, %v981_v46  ;;  %v1019_v51 = vmul.f32 %v1530_v56, %v985_v48  ;;  %v1020_v52 = vmul.f32 %v1532_v59, %v989_v49  ;;  %v1021_v57 = vmul.f32 %v1534_v62, %v993_v53 }
 0x412   : > { %v1022_v54 = vmul.f32 %v1536_v0, %v997_v58  ;;  %v1023_v55 = vmul.f32 %v1538_v1, %v1001_v25  ;;  %v1024_v56 = vmul.f32 %v1540_v2, %v1005_v26  ;;  %v1025_v33 = vmul.f32 %v1542_v3, %v1009_v27 }
 0x413   : > { %1028 = vperm.xlu0 %1508, %v1018_v47  }
 0x417   : > { %1033 = vperm.xlu0 %1508, %v1019_v51  }
 0x41b   : > { %1038 = vperm.xlu0 %1508, %v1020_v52  }
 0x41f   : > { %1043 = vperm.xlu0 %1508, %v1021_v57  }
 0x423   : > { %1048 = vperm.xlu0 %1508, %v1022_v54  }
 0x427   : > { %1053 = vperm.xlu0 %1508, %v1023_v55  }
 0x42b   : > { %1058 = vperm.xlu0 %1508, %v1024_v56  }
 0x42f   : > { %1063 = vperm.xlu0 %1508, %v1025_v33  }
 0x492   : > { %v1029_v59 = vpop.permute.xlu0 %1028 }
 0x493   : > { %v1066_v61 = vmul.f32 %v1029_v59, %v2047_v13 }
 0x495   : > { %v1074_v45 = vsel %vm412_vm1, %v1066_v61, 0.0 }
 0x496   : > { %v1034_v32 = vpop.permute.xlu0 %1033  ;;  %v1075_v3 = vrot.slane %v1074_v45, 4 }
 0x497   : > { %v1067_v60 = vmul.f32 %v1034_v32, %v2053_v16 }
 0x498   : > { %v1076_v8 = vadd.f32 %v1075_v3, %v1074_v45 }
 0x499   : > { %v1081_v62 = vsel %vm412_vm1, %v1067_v60, 0.0 }
 0x49a   : > { %v1039_v41 = vpop.permute.xlu0 %1038  ;;  %v1082_v40 = vrot.slane %v1081_v62, 4 }
 0x49b   : > { %v1068_v63 = vmul.f32 %v1039_v41, %v2056_v17 }
 0x49c   : > { %v1083_v16 = vadd.f32 %v1082_v40, %v1081_v62 }
 0x49d   : > { %v1088_v0 = vsel %vm412_vm1, %v1068_v63, 0.0 }
 0x49e   : > { %v1044_v50 = vpop.permute.xlu0 %1043  ;;  %v1089_v1 = vrot.slane %v1088_v0, 4  ;;  %v1084_v10 = vrot.slane %v1083_v16, 2 }
 0x49f   : > { %v1069_v2 = vmul.f32 %v1044_v50, %v2064_v18  ;;  %v1077_v18 = vrot.slane %v1076_v8, 2 }
 0x4a0   : > { %v1090_v6 = vadd.f32 %v1089_v1, %v1088_v0  ;;  %v1085_v29 = vadd.f32 %v1084_v10, %v1083_v16 }
 0x4a1   : > { %v1095_v4 = vsel %vm412_vm1, %v1069_v2, 0.0  ;;  %v1078_v36 = vadd.f32 %v1077_v18, %v1076_v8 }
 0x4a2   : > { %v1096_v5 = vrot.slane %v1095_v4, 4  ;;  %v1049_v13 = vpop.permute.xlu0 %1048  ;;  %v1091_v14 = vrot.slane %v1090_v6, 2  ;;  %v1086_v43 = vrot.slane %v1085_v29, 1 }
 0x4a3   : > { %v1070_v7 = vmul.f32 %v1049_v13, %v2067_v19  ;;  %v1079_v51 = vrot.slane %v1078_v36, 1 }
 0x4a4   : > { %v1097_v17 = vadd.f32 %v1096_v5, %v1095_v4  ;;  %v1092_v19 = vadd.f32 %v1091_v14, %v1090_v6  ;;  %v1087_v58 = vadd.f32 %v1086_v43, %v1085_v29 }
 0x4a5   : > { %v1102_v9 = vsel %vm412_vm1, %v1070_v7, 0.0  ;;  %v1080_v56 = vadd.f32 %v1079_v51, %v1078_v36 }
 0x4a6   : > { %v1103_v11 = vrot.slane %v1102_v9, 4  ;;  %v1054_v12 = vpop.permute.xlu0 %1053  ;;  %v1098_v23 = vrot.slane %v1097_v17, 2  ;;  %v1093_v47 = vrot.slane %v1092_v19, 1  ;;  %v1131_v60 = vmul.f32 %v1087_v58, %v1087_v58 }
 0x4a7   : > { %v1071_v15 = vmul.f32 %v1054_v12, %v2074_v20  ;;  %v1130_v63 = vmul.f32 %v1080_v56, %v1080_v56 }
 0x4a8   : > { %v1104_v24 = vadd.f32 %v1103_v11, %v1102_v9  ;;  %v1099_v37 = vadd.f32 %v1098_v23, %v1097_v17  ;;  %v1094_v26 = vadd.f32 %v1093_v47, %v1092_v19 }
 0x4a9   : > { %v1109_v28 = vsel %vm412_vm1, %v1071_v15, 0.0  ;;  %v1146_v1 = vsel %vm817_vm2, %v1131_v60, %v1130_v63 }
 0x4aa   : > { %v1105_v30 = vrot.slane %v1104_v24, 2  ;;  %v1110_v31 = vrot.slane %v1109_v28, 4  ;;  %v1059_v34 = vpop.permute.xlu0 %1058  ;;  %v1100_v49 = vrot.slane %v1099_v37, 1  ;;  %v1132_v62 = vmul.f32 %v1094_v26, %v1094_v26 }
 0x4ab   : > { %v1072_v35 = vmul.f32 %v1059_v34, %v2077_v21 }
 0x4ac   : > { %v1111_v38 = vadd.f32 %v1110_v31, %v1109_v28  ;;  %v1106_v39 = vadd.f32 %v1105_v30, %v1104_v24  ;;  %v1101_v27 = vadd.f32 %v1100_v49, %v1099_v37  ;;  %v1147_v16 = vsel %vm819_vm3, %v1132_v62, %v1146_v1 }
 0x4ad   : > { %v1116_v42 = vsel %vm412_vm1, %v1072_v35, 0.0 }
 0x4ae   : > { %v1112_v20 = vrot.slane %v1111_v38, 2  ;;  %v1117_v44 = vrot.slane %v1116_v42, 4  ;;  %v1064_v46 = vpop.permute.xlu0 %1063  ;;  %v1107_v57 = vrot.slane %v1106_v39, 1  ;;  %v1133_v45 = vmul.f32 %v1101_v27, %v1101_v27 }
 0x4af   : > { %v1073_v48 = vmul.f32 %v1064_v46, %v2084_v22 }
 0x4b0   : > { %v1113_v52 = vadd.f32 %v1112_v20, %v1111_v38  ;;  %v1118_v53 = vadd.f32 %v1117_v44, %v1116_v42  ;;  %v1108_v32 = vadd.f32 %v1107_v57, %v1106_v39  ;;  %v1148_v13 = vsel %vm821_vm4, %v1133_v45, %v1147_v16 }
 0x4b1   : > { %v1123_v21 = vsel %vm412_vm1, %v1073_v48, 0.0 }
 0x4b2   : > { %v1114_v54 = vrot.slane %v1113_v52, 1  ;;  %v1119_v25 = vrot.slane %v1118_v53, 2  ;;  %v1124_v55 = vrot.slane %v1123_v21, 4  ;;  %v1134_v50 = vmul.f32 %v1108_v32, %v1108_v32 }
 0x4b4   : > { %v1120_v33 = vadd.f32 %v1119_v25, %v1118_v53  ;;  %v1125_v59 = vadd.f32 %v1124_v55, %v1123_v21  ;;  %v1115_v61 = vadd.f32 %v1114_v54, %v1113_v52  ;;  %v1149_v6 = vsel %vm823_vm5, %v1134_v50, %v1148_v13 }
 0x4b6   : > { %v1121_v22 = vrot.slane %v1120_v33, 1  ;;  %v1126_v41 = vrot.slane %v1125_v59, 2  ;;  %v1135_v2 = vmul.f32 %v1115_v61, %v1115_v61 }
 0x4b8   : > { %v1122_v0 = vadd.f32 %v1121_v22, %v1120_v33  ;;  %v1127_v40 = vadd.f32 %v1126_v41, %v1125_v59  ;;  %v1150_v8 = vsel %vm825_vm6, %v1135_v2, %v1149_v6 }
 0x4ba   : > { %v1128_v3 = vrot.slane %v1127_v40, 1  ;;  %v1136_v4 = vmul.f32 %v1122_v0, %v1122_v0 }
 0x4bc   : > { %v1129_v5 = vadd.f32 %v1128_v3, %v1127_v40  ;;  %v1151_v17 = vsel %vm827_vm7, %v1136_v4, %v1150_v8 }
 0x4be   : > { %v1137_v7 = vmul.f32 %v1129_v5, %v1129_v5 }
 0x4c0   : > { %v1152_v9 = vsel %vm829_vm8, %v1137_v7, %v1151_v17 }
 0x4c1   : > { %v1154_v10 = vsel %vm412_vm1, %v1152_v9, 0.0 }
 0x4c2   : > { %1155 = vadd.xlane.f32.xlu1 %v1154_v10 }
 0x54f   : > { %v1156_v11 = vpop.xlane.xlu1 %1155 }
 0x550   : > { %v1157_v12 = vadd.f32 1e-12, %v1156_v11 }
 0x552   : > { %1545 = vrsqrt.f32 %v1157_v12 }
 0x55c   : > { %v1546_v14 = vpop.eup %1545 }
 0x55d   : > { %v1160_v15 = vrot.slane %v1546_v14, 1  ;;  %v1161_v18 = vrot.slane %v1546_v14, 2  ;;  %v1162_v23 = vrot.slane %v1546_v14, 3  ;;  %v1163_v24 = vrot.slane %v1546_v14, 4 }
 0x55e   : > { %v1164_v28 = vrot.slane %v1546_v14, 5  ;;  %v1165_v29 = vrot.slane %v1546_v14, 6  ;;  %v1166_v30 = vrot.slane %v1546_v14, 7  ;;  %v1175_v36 = vmul.f32 %v1546_v14, %v1080_v56 }
 0x55f   : > { %v1176_v31 = vmul.f32 %v1160_v15, %v1087_v58  ;;  %v1177_v34 = vmul.f32 %v1161_v18, %v1094_v26  ;;  %v1178_v19 = vmul.f32 %v1162_v23, %v1101_v27  ;;  %v1179_v35 = vmul.f32 %v1163_v24, %v1108_v32 }
 0x560   : > { %v1180_v37 = vmul.f32 %v1164_v28, %v1115_v61  ;;  %v1181_v42 = vmul.f32 %v1165_v29, %v1122_v0  ;;  %v1182_v43 = vmul.f32 %v1166_v30, %v1129_v5 }
 0x561   : > { %v1191_v38 = vrot.slane %v1176_v31, 7  ;;  %v1193_v39 = vrot.slane %v1177_v34, 6  ;;  %v1195_v44 = vrot.slane %v1178_v19, 5  ;;  %v1197_v47 = vrot.slane %v1179_v35, 4 }
 0x562   : > { %v1199_v51 = vrot.slane %v1180_v37, 3  ;;  %v1201_v52 = vrot.slane %v1181_v42, 2  ;;  %v1203_v57 = vrot.slane %v1182_v43, 1 }
 0x563   : > { %v1192_v20 = vsel %vm817_vm2, %v1191_v38, %v1175_v36 }
 0x564   : > { %v1194_v46 = vsel %vm819_vm3, %v1193_v39, %v1192_v20 }
 0x565   : > { %v1196_v48 = vsel %vm821_vm4, %v1195_v44, %v1194_v46 }
 0x566   : > { %v1198_v49 = vsel %vm823_vm5, %v1197_v47, %v1196_v48 }
 0x567   : > { %v1200_v53 = vsel %vm825_vm6, %v1199_v51, %v1198_v49 }
 0x568   : > { %v1202_v21 = vsel %vm827_vm7, %v1201_v52, %v1200_v53 }
 0x569   : > { %v1204_v58 = vsel %vm829_vm8, %v1203_v57, %v1202_v21 }
 0x56a   : > { %1206 = vst.msk [vmem:[%s390_s28] sm:$0xff] %vm412_vm1, %v1204_v58 }
 0x56b   : > { %1676 = shalt.err (!%p1673_p7)
}
 0x56c   : > { %s1677_s9 = scalar_lea.hbm %s2229_s20, 128  ;;  %s1681_s24 = scalar_lea.hbm %s2283_s8, 256 }
 0x56d   : > { %p1678_p2 = scmp.ne.s32.totalorder %s2229_s20, %s1677_s9  ;;  %p1682_p0 = scmp.lt.u32.totalorder %s2229_s20, %s2283_s8 }
 0x56e   : > { %p1683_p9 = scmp.lt.u32.totalorder %s1681_s24, %s1677_s9  ;;  %p1685_p1 = scmp.lt.u32.totalorder %s1677_s9, %s2229_s20 }
 0x56f   : > { %p1679_p8 = pnand %p1678_p2, %p2315_p13 }
 0x570   : > { %p1684_p12 = por %p1683_p9, %p1682_p0 }
 0x571   : > { %p1680_p11 = pneg %p1679_p8 }
 0x572   : > { %p1686_p6 = por %p1685_p1, %p1684_p12 }
 0x574   : > { %p1687_p10 = pnand %p1686_p6, %p1680_p11 }
 0x576   : > { %1690 = shalt.err (!%p1687_p10)
}
 0x577   : > { %1440 = dma.vmem_to_hbm [thread:$0]  (%p2315_p13), %s2231_s26, 128, %s2229_s20, %s1208_s7  }
 0x578 PF: > { %s1233_s15 = sand.u32 1, %s1729_s29   ;;  %p2316_p4 = scmp.ne.s32.totalorder %s2296_s13, 0 }
 0x579   : > { %p2317_p5 = scmp.ge.s32.totalorder %s1741_s10, 2  ;;  %s1234_s23 = scalar_lea.sflag [#allocation5], %s1233_s15 }
 0x57b   : > { %p1457_p3 = pnand %p2317_p5, %p2316_p4 }
 0x57d   : > { %1724 = dma.done.wait (!%p1457_p3), %s1234_s23, 128  }
 0x57e   : > { %1726 = vsyncadd (!%p1457_p3), %s1234_s23, 4294967168  ;;  %s2318_s25 = sld [smem:[#allocation17_spill]]  ;;  %s2319_s9 = sld [smem:[#allocation18_spill]] }
 0x57f   : > { %p26_p7 = scmp.ge.s32.totalorder %s1919_s17, 4   ;;  %s2320_s29 = smov %s1733_s30 }
 0x580   : > { %s2322_s10 = smov %s1919_s17 }
 0x581   :  { %28 = sbr.rel (!%p26_p7) target bundleno = 13 (0xd), region = 118 }
 0x584   : > { %s2321_s30 = smov %s2318_s25 }
 0x588   :  { %1239 = vsyncpa [#allocation4], 1 }
 0x589   :  { %1241 = vsyncpa [#allocation4 + $0x1], 1 }
 0x58a   :  { %1242 = vsyncpa [#allocation7], 1 }
 0x58b   :  { %1244 = vsyncpa [#allocation7 + $0x1], 1 }
 0x58c   :  { %1245 = vsyncpa [#allocation10], 1 }
 0x58d   :  { %1246 = vsyncpa [#allocation5], 1 }
 0x58e   :  { %1248 = vsyncpa [#allocation5 + $0x1], 1 }

</bundles_post_ra>
